<compile_context>
chip_gen: v7x
topology: tpu7x:2x2x1
jax: 0.10.0
libtpu: 0.0.40
codegen_flags: <defaults>
</compile_context>

<pallas_src>
import numpy as np
import jax
import jax.numpy as jnp
from jax import lax
from jax.experimental import pallas as pl
from jax.experimental.pallas import tpu as pltpu

D_PAD = 128  # hidden width == lane width, so layers 2/3 are clean MXU tiles


def _round_up(x, m):
    return (x + m - 1) // m * m


# ------------------------------ fused kernel --------------------------------

def fused_kernel(xi_ref, xj_ref, w1a_ref, w1b_ref, b1_ref,
                 w2_ref, b2_ref, w3_ref, b3_ref,
                 gsel_ref, asel_ref, csel_ref, sig_ref, out_ref):
    """MLP -> scatter into eye(N) upper triangle -> sigma^2 * (K^T K)."""
    # ---- MLP -------------------------------------------------------------
    # Layer 1 (in_features = 2): VPU broadcast math, no MXU / no padded input.
    h1 = jnp.tanh(xi_ref[...] * w1a_ref[...]
                  + xj_ref[...] * w1b_ref[...]
                  + b1_ref[...])                                     # (P_pad, 128)
    # Layers 2/3 on the MXU; weight/bias padding lanes are exactly zero so
    # ReLU keeps the padding lanes zero.
    h2 = jnp.maximum(
        jnp.dot(h1, w2_ref[...], preferred_element_type=jnp.float32)
        + b2_ref[...], 0.0)                                          # (P_pad, 128)
    klist = (jnp.dot(h2, w3_ref[...], preferred_element_type=jnp.float32)
             + b3_ref[...])                                          # col 0 = K_list

    # ---- scatter into strictly-upper triangle of K = eye(N) ---------------
    # gsel picks klist[kidx[m]] (reproducing the module's buggy indexing),
    # asel/csel place value m at (rows[m], cols[m]).
    vals = jnp.dot(gsel_ref[...], klist,
                   preferred_element_type=jnp.float32)[:, 0:1]       # (M_pad, 1)
    n = out_ref.shape[0]
    r_id = lax.broadcasted_iota(jnp.int32, (n, n), 0)
    c_id = lax.broadcasted_iota(jnp.int32, (n, n), 1)
    eye = jnp.where(r_id == c_id, 1.0, 0.0).astype(jnp.float32)
    K = eye + jnp.dot(asel_ref[...], vals * csel_ref[...],
                      preferred_element_type=jnp.float32)            # (N, N)

    # ---- sigma^2 * K^T @ K  (contract dim 0 directly; no explicit transpose)
    s = sig_ref[0, 0]
    out_ref[...] = (s * s) * lax.dot_general(
        K, K, (((0,), (0,)), ((), ())), preferred_element_type=jnp.float32)


_VMEM = pl.BlockSpec(memory_space=pltpu.MemorySpace.VMEM)
_SMEM = pl.BlockSpec(memory_space=pltpu.MemorySpace.SMEM)


def run_fused(xi, xj, padded_params, gsel, asel, csel, sigma, n):
    w1a, w1b, b1p, w2p, b2p, w3p, b3p = padded_params
    return pl.pallas_call(
        fused_kernel,
        out_shape=jax.ShapeDtypeStruct((n, n), jnp.float32),
        in_specs=[_VMEM] * 12 + [_SMEM],
        out_specs=_VMEM,
    )(xi, xj, w1a, w1b, b1p, w2p, b2p, w3p, b3p, gsel, asel, csel, sigma)


# ------------------------------ parameters ----------------------------------

def init_params(key):
    """Deterministic PyTorch-default-style (uniform) Linear init."""
    ks = jax.random.split(key, 6)

    def linear(kw, kb, fan_in, fan_out):
        bound = 1.0 / np.sqrt(fan_in)
        w = jax.random.uniform(kw, (fan_in, fan_out), jnp.float32, -bound, bound)
        b = jax.random.uniform(kb, (fan_out,), jnp.float32, -bound, bound)
        return w, b

    w1, b1 = linear(ks[0], ks[1], 2, 128)
    w2, b2 = linear(ks[2], ks[3], 128, 32)
    w3, b3 = linear(ks[4], ks[5], 32, 1)
    return (w1, b1), (w2, b2), (w3, b3)


def pad_params(params):
    (w1, b1), (w2, b2), (w3, b3) = params
    w1a = w1[0:1, :]                                            # (1, 128)
    w1b = w1[1:2, :]                                            # (1, 128)
    b1p = b1[None, :]                                           # (1, 128)
    # padding lanes must be exactly zero (ReLU keeps them zero)
    w2p = jnp.zeros((D_PAD, D_PAD), jnp.float32).at[:, :32].set(w2)
    b2p = jnp.zeros((1, D_PAD), jnp.float32).at[0, :32].set(b2)
    w3p = jnp.zeros((D_PAD, D_PAD), jnp.float32).at[:32, :1].set(w3)
    b3p = jnp.zeros((1, D_PAD), jnp.float32).at[0, :1].set(b3)
    return w1a, w1b, b1p, w2p, b2p, w3p, b3p


# ------------------------------ forward pass ---------------------------------

def build_pair_constants(n):
    """Simulate the module's Python loops at trace time (including the
    buggy `last_col_num` K_list indexing) so the mapping matches exactly."""
    ii, jj, rows, cols, kidx = [], [], [], [], []
    last_col_num = 0
    for i in range(n):
        for j in range(n - i):
            ii.append(i)
            jj.append(i + j)
            if j != 0:
                rows.append(i)
                cols.append(i + j)
                kidx.append(j + last_col_num)
        last_col_num = j + 1
    return ii, jj, rows, cols, kidx


def neuro_kernel_forward(x, params, sigma):
    """x: (N,) time vector -> (N, N) float32 covariance (f64 cast on host)."""
    n = int(x.shape[0])
    ii, jj, rows, cols, kidx = build_pair_constants(n)

    # Dedupe: only compute the MLP rows that the (buggy) indexing ever reads.
    used = sorted(set(kidx))
    remap = {p: q for q, p in enumerate(used)}
    p_red = len(used)
    m = len(rows)
    p_pad = _round_up(max(p_red, 8), 8)
    m_pad = _round_up(max(m, 8), 8)

    xi_idx = np.asarray([ii[p] for p in used], np.int32)
    xj_idx = np.asarray([jj[p] for p in used], np.int32)
    xi = jnp.zeros((p_pad, 1), jnp.float32).at[:p_red, 0].set(
        x[xi_idx].astype(jnp.float32))
    xj = jnp.zeros((p_pad, 1), jnp.float32).at[:p_red, 0].set(
        x[xj_idx].astype(jnp.float32))

    # Trace-time-constant one-hot selection matrices for the in-kernel scatter.
    gsel = np.zeros((m_pad, p_pad), np.float32)
    gsel[np.arange(m), [remap[k] for k in kidx]] = 1.0
    asel = np.zeros((n, m_pad), np.float32)
    asel[np.asarray(rows), np.arange(m)] = 1.0
    csel = np.zeros((m_pad, n), np.float32)
    csel[np.arange(m), np.asarray(cols)] = 1.0

    # NOTE: for large N (P ~ N^2/2), add a 1-D grid over the pair rows with
    # BlockSpec((TILE_P, 128), ...) and dimension_semantics=("parallel",);
    # unnecessary at this size where everything fits in VMEM.
    return run_fused(xi, xj, pad_params(params),
                     jnp.asarray(gsel), jnp.asarray(asel), jnp.asarray(csel),
                     sigma, n)


# Pure-JAX reference (literal emulation of the PyTorch module, no Pallas).
def reference_forward(x, params, sigma):
    (w1, b1), (w2, b2), (w3, b3) = params
    n = int(x.shape[0])
    ii, jj, rows, cols, kidx = build_pair_constants(n)
    xb = jnp.stack([x[np.asarray(ii)], x[np.asarray(jj)]], axis=1).astype(jnp.float32)
    h1 = jnp.tanh(xb @ w1 + b1)
    h2 = jnp.maximum(h1 @ w2 + b2, 0.0)
    klist = (h2 @ w3 + b3)[:, 0]
    K = jnp.eye(n, dtype=jnp.float32)
    K = K.at[np.asarray(rows), np.asarray(cols)].set(klist[np.asarray(kidx)])
    s = sigma[0, 0]
    return (s * s) * (K.T @ K)


if __name__ == "__main__":
    key = jax.random.PRNGKey(0)
    k_x, k_p = jax.random.split(key)

    N = 8  # length of the time vector
    x = jax.random.uniform(k_x, (N,), jnp.float32, 0.0, 4.0)

    params = init_params(k_p)
    sigma = jnp.ones((1, 1), jnp.float32)  # Sigma() parameter initialised to 1

    k_dev = neuro_kernel_forward(x, params, sigma)       # f32 on device
    k_dev = jax.block_until_ready(k_dev)

    # .double(): done on host — TPU has no native f64 and the math is f32.
    K = np.asarray(k_dev, dtype=np.float64)
    assert K.shape == (N, N) and K.dtype == np.float64

    K_ref = np.asarray(
        jax.block_until_ready(reference_forward(x, params, sigma)),
        dtype=np.float64)
    np.testing.assert_allclose(K, K_ref, rtol=1e-3, atol=1e-3)

    print("KERNEL_OK")
</pallas_src>

<mosaic_0001>
module attributes {stable_mosaic.version = 11 : i64} {
  func.func @fused_kernel(%arg0: memref<16x1xf32, #tpu.memory_space<vmem>>, %arg1: memref<16x1xf32, #tpu.memory_space<vmem>>, %arg2: memref<1x128xf32, #tpu.memory_space<vmem>>, %arg3: memref<1x128xf32, #tpu.memory_space<vmem>>, %arg4: memref<1x128xf32, #tpu.memory_space<vmem>>, %arg5: memref<128x128xf32, #tpu.memory_space<vmem>>, %arg6: memref<1x128xf32, #tpu.memory_space<vmem>>, %arg7: memref<128x128xf32, #tpu.memory_space<vmem>>, %arg8: memref<1x128xf32, #tpu.memory_space<vmem>>, %arg9: memref<32x16xf32, #tpu.memory_space<vmem>>, %arg10: memref<8x32xf32, #tpu.memory_space<vmem>>, %arg11: memref<32x8xf32, #tpu.memory_space<vmem>>, %arg12: memref<1x1xf32, #tpu.memory_space<smem>>, %arg13: memref<8x8xf32, #tpu.memory_space<vmem>>) attributes {dimension_semantics = [], scalar_prefetch = 0 : i64, scratch_operands = 0 : i64, tpu.core_type = #tpu.core_type<tc>} {
    %c0 = arith.constant 0 : index
    %c0_0 = arith.constant 0 : index
    %0 = vector.load %arg0[%c0, %c0_0] : memref<16x1xf32, #tpu.memory_space<vmem>>, vector<16x1xf32>
    %c0_1 = arith.constant 0 : index
    %c0_2 = arith.constant 0 : index
    %1 = vector.load %arg2[%c0_1, %c0_2] : memref<1x128xf32, #tpu.memory_space<vmem>>, vector<1x128xf32>
    %2 = vector.broadcast %0 : vector<16x1xf32> to vector<16x128xf32>
    %3 = vector.broadcast %1 : vector<1x128xf32> to vector<16x128xf32>
    %4 = arith.mulf %2, %3 : vector<16x128xf32>
    %c0_3 = arith.constant 0 : index
    %c0_4 = arith.constant 0 : index
    %5 = vector.load %arg1[%c0_3, %c0_4] : memref<16x1xf32, #tpu.memory_space<vmem>>, vector<16x1xf32>
    %c0_5 = arith.constant 0 : index
    %c0_6 = arith.constant 0 : index
    %6 = vector.load %arg3[%c0_5, %c0_6] : memref<1x128xf32, #tpu.memory_space<vmem>>, vector<1x128xf32>
    %7 = vector.broadcast %5 : vector<16x1xf32> to vector<16x128xf32>
    %8 = vector.broadcast %6 : vector<1x128xf32> to vector<16x128xf32>
    %9 = arith.mulf %7, %8 : vector<16x128xf32>
    %10 = arith.addf %4, %9 : vector<16x128xf32>
    %c0_7 = arith.constant 0 : index
    %c0_8 = arith.constant 0 : index
    %11 = vector.load %arg4[%c0_7, %c0_8] : memref<1x128xf32, #tpu.memory_space<vmem>>, vector<1x128xf32>
    %12 = vector.broadcast %11 : vector<1x128xf32> to vector<16x128xf32>
    %13 = arith.addf %10, %12 : vector<16x128xf32>
    %14 = math.tanh %13 : vector<16x128xf32>
    %c0_9 = arith.constant 0 : index
    %c0_10 = arith.constant 0 : index
    %15 = vector.load %arg5[%c0_9, %c0_10] : memref<128x128xf32, #tpu.memory_space<vmem>>, vector<128x128xf32>
    %cst = arith.constant dense<0.000000e+00> : vector<16x128xf32>
    %16 = tpu.matmul %14, %15, %cst {dimension_numbers = #tpu.dot_dimension_numbers<[1], [0], [0], [1], [0, 0, 1, 1], [], []>} : vector<16x128xf32>, vector<128x128xf32>, vector<16x128xf32> -> vector<16x128xf32>
    %c0_11 = arith.constant 0 : index
    %c0_12 = arith.constant 0 : index
    %17 = vector.load %arg6[%c0_11, %c0_12] : memref<1x128xf32, #tpu.memory_space<vmem>>, vector<1x128xf32>
    %18 = vector.broadcast %17 : vector<1x128xf32> to vector<16x128xf32>
    %19 = arith.addf %16, %18 : vector<16x128xf32>
    %cst_13 = arith.constant 0.000000e+00 : f32
    %20 = vector.broadcast %cst_13 : f32 to vector<16x128xf32>
    %21 = arith.maximumf %19, %20 : vector<16x128xf32>
    %c0_14 = arith.constant 0 : index
    %c0_15 = arith.constant 0 : index
    %22 = vector.load %arg7[%c0_14, %c0_15] : memref<128x128xf32, #tpu.memory_space<vmem>>, vector<128x128xf32>
    %cst_16 = arith.constant dense<0.000000e+00> : vector<16x128xf32>
    %23 = tpu.matmul %21, %22, %cst_16 {dimension_numbers = #tpu.dot_dimension_numbers<[1], [0], [0], [1], [0, 0, 1, 1], [], []>} : vector<16x128xf32>, vector<128x128xf32>, vector<16x128xf32> -> vector<16x128xf32>
    %c0_17 = arith.constant 0 : index
    %c0_18 = arith.constant 0 : index
    %24 = vector.load %arg8[%c0_17, %c0_18] : memref<1x128xf32, #tpu.memory_space<vmem>>, vector<1x128xf32>
    %25 = vector.broadcast %24 : vector<1x128xf32> to vector<16x128xf32>
    %26 = arith.addf %23, %25 : vector<16x128xf32>
    %c0_19 = arith.constant 0 : index
    %c0_20 = arith.constant 0 : index
    %27 = vector.load %arg9[%c0_19, %c0_20] : memref<32x16xf32, #tpu.memory_space<vmem>>, vector<32x16xf32>
    %cst_21 = arith.constant dense<0.000000e+00> : vector<32x128xf32>
    %28 = tpu.matmul %27, %26, %cst_21 {dimension_numbers = #tpu.dot_dimension_numbers<[1], [0], [0], [1], [0, 0, 1, 1], [], []>} : vector<32x16xf32>, vector<16x128xf32>, vector<32x128xf32> -> vector<32x128xf32>
    %29 = vector.extract_strided_slice %28 {offsets = [0, 0], sizes = [32, 1], strides = [1, 1]} : vector<32x128xf32> to vector<32x1xf32>
    %30 = tpu.iota {dimensions = array<i32: 0>} : vector<8x8xi32>
    %31 = tpu.iota {dimensions = array<i32: 1>} : vector<8x8xi32>
    %32 = arith.cmpi eq, %30, %31 : vector<8x8xi32>
    %cst_22 = arith.constant 1.000000e+00 : f32
    %cst_23 = arith.constant 0.000000e+00 : f32
    %33 = vector.broadcast %cst_22 : f32 to vector<8x8xf32>
    %34 = vector.broadcast %cst_23 : f32 to vector<8x8xf32>
    %35 = arith.select %32, %33, %34 : vector<8x8xi1>, vector<8x8xf32>
    %c0_24 = arith.constant 0 : index
    %c0_25 = arith.constant 0 : index
    %36 = vector.load %arg10[%c0_24, %c0_25] : memref<8x32xf32, #tpu.memory_space<vmem>>, vector<8x32xf32>
    %c0_26 = arith.constant 0 : index
    %c0_27 = arith.constant 0 : index
    %37 = vector.load %arg11[%c0_26, %c0_27] : memref<32x8xf32, #tpu.memory_space<vmem>>, vector<32x8xf32>
    %38 = vector.broadcast %29 : vector<32x1xf32> to vector<32x8xf32>
    %39 = arith.mulf %38, %37 : vector<32x8xf32>
    %cst_28 = arith.constant dense<0.000000e+00> : vector<8x8xf32>
    %40 = tpu.matmul %36, %39, %cst_28 {dimension_numbers = #tpu.dot_dimension_numbers<[1], [0], [0], [1], [0, 0, 1, 1], [], []>} : vector<8x32xf32>, vector<32x8xf32>, vector<8x8xf32> -> vector<8x8xf32>
    %41 = arith.addf %35, %40 : vector<8x8xf32>
    %c0_29 = arith.constant 0 : index
    %c0_30 = arith.constant 0 : index
    %42 = memref.load %arg12[%c0_29, %c0_30] : memref<1x1xf32, #tpu.memory_space<smem>>
    %43 = arith.mulf %42, %42 : f32
    %cst_31 = arith.constant dense<0.000000e+00> : vector<8x8xf32>
    %44 = tpu.matmul %41, %41, %cst_31 {dimension_numbers = #tpu.dot_dimension_numbers<[0], [0], [1], [1], [0, 1, 1, 1], [], []>} : vector<8x8xf32>, vector<8x8xf32>, vector<8x8xf32> -> vector<8x8xf32>
    %45 = vector.broadcast %43 : f32 to vector<8x8xf32>
    %46 = arith.mulf %45, %44 : vector<8x8xf32>
    %c0_32 = arith.constant 0 : index
    %c0_33 = arith.constant 0 : index
    %47 = vector.load %arg13[%c0_32, %c0_33] : memref<8x8xf32, #tpu.memory_space<vmem>>, vector<8x8xf32>
    tpu.vector_store %arg13[%c0_32, %c0_33], %46 {strides = array<i32>} : memref<8x8xf32, #tpu.memory_space<vmem>>, vector<8x8xf32>,
    return
  }
}

</mosaic_0001>

<bundles_post_ra>
// kernel: tpu_custom_call.1
= control target key start
LH: loop header
LB: loop body
LE: loop exit
PB: predicated region body
PF: predicated region fallthrough
CT: control target
= control target key end

     0   :  { %19 = vsyncpa [#allocation4], 0  ;;  %s1335_s0 = inlined_call_operand.vmem [shape: f32[16,1], index: 0, kind: input, shape index: {}]   ;;  %s1336_s1 = inlined_call_operand.vmem [shape: f32[16,1], index: 1, kind: input, shape index: {}]   ;;  %s1337_s2 = inlined_call_operand.hbm [shape: f32[1,128], index: 2, kind: input, shape index: {}]   ;;  %s1338_s3 = inlined_call_operand.hbm [shape: f32[1,128], index: 3, kind: input, shape index: {}]   ;;  %s1339_s4 = inlined_call_operand.hbm [shape: f32[1,128], index: 4, kind: input, shape index: {}]   ;;  %s1340_s5 = inlined_call_operand.vmem [shape: f32[128,128], index: 5, kind: input, shape index: {}]   ;;  %s1341_s6 = inlined_call_operand.hbm [shape: f32[1,128], index: 6, kind: input, shape index: {}]   ;;  %s1342_s7 = inlined_call_operand.hbm [shape: f32[128,128], index: 7, kind: input, shape index: {}]   ;;  %s1343_s8 = inlined_call_operand.vmem [shape: f32[1,128], index: 8, kind: input, shape index: {}]   ;;  %s1344_s9 = inlined_call_operand.vmem [shape: f32[32,16], index: 9, kind: input, shape index: {}]   ;;  %s1345_s10 = inlined_call_operand.vmem [shape: f32[8,32], index: 10, kind: input, shape index: {}]   ;;  %s1346_s11 = inlined_call_operand.vmem [shape: f32[32,8], index: 11, kind: input, shape index: {}]   ;;  %s1347_s12 = inlined_call_operand.<no memory space> [shape: f32[1,1], index: 12, kind: input, shape index: {}]   ;;  %s1348_s13 = inlined_call_operand.hbm [shape: f32[8,8], index: 13, kind: output, shape index: {}]  }
   0x1   :  { %20 = vsyncpa [#allocation7], 0 }
   0x2   :  { %21 = vsyncpa [#allocation10], 0 }
   0x3   :  { %22 = vsyncpa [#allocation5], 0  ;;  %s1087_s25 = smov [#allocation6]   ;;  %s1088_s27 = smov [#allocation9]  }
   0x4   :  { %s43_s26 = sshll.u32 %s1087_s25, 4  ;;  %s65_s28 = sshll.u32 %s1088_s27, 4  ;;  %s44_s26 = int_to_ptr.vmem [resolvable:$true] %s43_s26  ;;  %s66_s28 = int_to_ptr.vmem [resolvable:$true] %s65_s28 }
   0x5   :  { %s947_s14 = scalar_lea.hbm %s1338_s3, 16 }
   0x6   :  { %p948_p0 = scmp.ne.s32.totalorder %s1338_s3, %s947_s14  ;;  %p951_p1 = scmp.lt.u32.totalorder %s947_s14, %s1338_s3 }
   0x8   :  { %p953_p2 = pnand %p951_p1, %p948_p0 }
   0xa   :  { %956 = shalt.err (!%p953_p2)
}
   0xb   :  { %s957_s19 = scalar_lea.vmem %s44_s26, 16  ;;  %s961_s20 = scalar_lea.vmem %s44_s26, 32 }
   0xc   :  { %p958_p3 = scmp.ne.s32.totalorder %s44_s26, %s957_s19  ;;  %p962_p4 = scmp.lt.s32.totalorder %s44_s26, %s44_s26 }
   0xd   :  { %p963_p5 = scmp.lt.s32.totalorder %s961_s20, %s957_s19 }
   0xf   :  { %p964_p6 = por %p963_p5, %p962_p4 }
  0x11   :  { %p965_p7 = pnand %p964_p6, %p958_p3 }
  0x13   :  { %968 = shalt.err (!%p965_p7)
}
  0x14   :  { %46 = dma.hbm_to_vmem [thread:$0]  %s1338_s3, 16, %s44_s26, [#allocation7]  }
  0x15   :  { %s969_s25 = scalar_lea.hbm %s1341_s6, 16 }
  0x16   :  { %p970_p8 = scmp.ne.s32.totalorder %s1341_s6, %s969_s25  ;;  %p973_p9 = scmp.lt.u32.totalorder %s969_s25, %s1341_s6 }
  0x18   :  { %p975_p10 = pnand %p973_p9, %p970_p8 }
  0x1a   :  { %978 = shalt.err (!%p975_p10)
}
  0x1b   :  { %s979_s15 = scalar_lea.vmem %s66_s28, 16  ;;  %s983_s16 = scalar_lea.vmem %s66_s28, 32 }
  0x1c   :  { %p980_p11 = scmp.ne.s32.totalorder %s66_s28, %s979_s15  ;;  %p984_p12 = scmp.lt.s32.totalorder %s66_s28, %s66_s28 }
  0x1d   :  { %p985_p13 = scmp.lt.s32.totalorder %s983_s16, %s979_s15 }
  0x1f   :  { %p986_p0 = por %p985_p13, %p984_p12 }
  0x21   :  { %p987_p1 = pnand %p986_p0, %p980_p11 }
  0x23   :  { %990 = shalt.err (!%p987_p1)
}
  0x24   :  { %68 = dma.hbm_to_vmem [thread:$0]  %s1341_s6, 16, %s66_s28, [#allocation10]  }
  0x25   :  { %s1089_s17 = smov [#allocation3]   ;;  %s1090_s19 = smov [#allocation8]  }
  0x26   :  { %s33_s18 = sshll.u32 %s1089_s17, 4  ;;  %s53_s20 = sshll.u32 %s1090_s19, 4  ;;  %s34_s18 = int_to_ptr.vmem [resolvable:$true] %s33_s18  ;;  %s54_s20 = int_to_ptr.vmem [resolvable:$true] %s53_s20 }
  0x27   :  { %s991_s23 = scalar_lea.hbm %s1337_s2, 16 }
  0x28   :  { %p992_p2 = scmp.ne.s32.totalorder %s1337_s2, %s991_s23  ;;  %p995_p3 = scmp.lt.u32.totalorder %s991_s23, %s1337_s2 }
  0x2a   :  { %p997_p4 = pnand %p995_p3, %p992_p2 }
  0x2c   :  { %1000 = shalt.err (!%p997_p4)
}
  0x2d   :  { %s1001_s6 = scalar_lea.vmem %s34_s18, 16  ;;  %s1005_s28 = scalar_lea.vmem %s34_s18, 32 }
  0x2e   :  { %p1002_p5 = scmp.ne.s32.totalorder %s34_s18, %s1001_s6  ;;  %p1006_p6 = scmp.lt.s32.totalorder %s34_s18, %s34_s18 }
  0x2f   :  { %p1007_p7 = scmp.lt.s32.totalorder %s1005_s28, %s1001_s6 }
  0x31   :  { %p1008_p8 = por %p1007_p7, %p1006_p6 }
  0x33   :  { %p1009_p9 = pnand %p1008_p8, %p1002_p5 }
  0x35   :  { %1012 = shalt.err (!%p1009_p9)
}
  0x36   :  { %36 = dma.hbm_to_vmem [thread:$0]  %s1337_s2, 16, %s34_s18, [#allocation4]  }
  0x37   :  { %s1013_s3 = scalar_lea.hbm %s1339_s4, 16 }
  0x38   :  { %p1014_p10 = scmp.ne.s32.totalorder %s1339_s4, %s1013_s3  ;;  %p1017_p11 = scmp.lt.u32.totalorder %s1013_s3, %s1339_s4 }
  0x3a   :  { %p1019_p12 = pnand %p1017_p11, %p1014_p10 }
  0x3c   :  { %1022 = shalt.err (!%p1019_p12)
}
  0x3d   :  { %s1023_s22 = scalar_lea.vmem %s54_s20, 16  ;;  %s1027_s23 = scalar_lea.vmem %s54_s20, 32 }
  0x3e   :  { %p1024_p13 = scmp.ne.s32.totalorder %s54_s20, %s1023_s22  ;;  %p1028_p0 = scmp.lt.s32.totalorder %s54_s20, %s54_s20 }
  0x3f   :  { %p1029_p1 = scmp.lt.s32.totalorder %s1027_s23, %s1023_s22 }
  0x41   :  { %p1030_p2 = por %p1029_p1, %p1028_p0 }
  0x43   :  { %p1031_p3 = pnand %p1030_p2, %p1024_p13 }
  0x45   :  { %1034 = shalt.err (!%p1031_p3)
}
  0x46   :  { %56 = dma.hbm_to_vmem [thread:$0]  %s1339_s4, 16, %s54_s20, [#allocation7]  }
  0x47   :  { %s1091_s24 = smov [#allocation11]   ;;  %s1035_s6 = scalar_lea.hbm %s1342_s7, 2048 }
  0x48   :  { %s74_s25 = sshll.u32 %s1091_s24, 4  ;;  %p1036_p4 = scmp.ne.s32.totalorder %s1342_s7, %s1035_s6  ;;  %s75_s25 = int_to_ptr.vmem [resolvable:$true] %s74_s25 }
  0x49   :  { %p1039_p5 = scmp.lt.u32.totalorder %s1035_s6, %s1342_s7 }
  0x4b   :  { %p1041_p6 = pnand %p1039_p5, %p1036_p4 }
  0x4d   :  { %1044 = shalt.err (!%p1041_p6)
}
  0x4e   :  { %s1045_s16 = scalar_lea.vmem %s75_s25, 2048  ;;  %p1050_p8 = scmp.lt.s32.totalorder %s75_s25, %s75_s25 }
  0x4f   :  { %p1046_p7 = scmp.ne.s32.totalorder %s75_s25, %s1045_s16  ;;  %p1051_p9 = scmp.lt.s32.totalorder %s1045_s16, %s1045_s16 }
  0x51   :  { %p1052_p10 = por %p1051_p9, %p1050_p8 }
  0x53   :  { %p1053_p11 = pnand %p1052_p10, %p1046_p7 }
  0x55   :  { %1056 = shalt.err (!%p1053_p11)
}
  0x56   :  { %s1092_s4 = smov 128   ;;  %s1093_s20 = smov 8  }
  0x57   :  { %80 = dma.hbm_to_vmem [thread:$0]  %s1342_s7, 2048, %s75_s25, [#allocation10], %s1092_s4, %s1092_s4, %s1093_s20  }
  0x58   :  { %1079 = dma.done.wait [#allocation4], 16  }
  0x59   :  { %1080 = vsyncadd [#allocation4], 4294967280 }
  0x5a   :  { %1081 = dma.done.wait [#allocation7], 32  }
  0x5b   :  { %1082 = vsyncadd [#allocation7], 4294967264 }
  0x5c   :  { %1083 = dma.done.wait [#allocation10], 2064  }
  0x5d   :  { %1084 = vsyncadd [#allocation10], 4294965232  ;;  %v1094_v0 = vmov 0   ;;  %v107_v1 = vld [vmem:[%s1335_s0 + $0x8] sm:$0xff]  ;;  %v106_v2 = vld [vmem:[%s1335_s0] sm:$0xff]  ;;  %vm363_vm0 = vcmask 130048  }
  0x5e   :  { %942 = vset.pattern.permute.xlu1 %v1094_v0  ;;  %941 = vset.pattern.permute.xlu0 %v1094_v0  ;;  %v128_v3 = vld [vmem:[%s1336_s1 + $0x8] sm:$0xff]  ;;  %v161_v4 = vld [vmem:[%s1340_s5] sm:$0xff]  ;;  %v163_v8 = vld [vmem:[%s1340_s5 + $0x10] sm:$0xff]  ;;  %vm1096_vm1 = vmmov 0   ;;  %vm496_vm2 = vcmask 261120   ;;  %vm605_vm4 = vcmask 64512  }
  0x5f   :  { %116 = vperm.xlu1 %942, %v107_v1   ;;  %111 = vperm.xlu0 %941, %v106_v2   ;;  %v162_v5 = vld [vmem:[%s1340_s5 + $0x8] sm:$0xff]  ;;  %v127_v6 = vld [vmem:[%s1336_s1] sm:$0xff]  ;;  %v164_v9 = vld [vmem:[%s1340_s5 + $0x18] sm:$0xff]  ;;  %s1098_s27 = smov [#allocation12]  }
  0x60   :  { %v855_v7 = vpack.c.bf16 %v162_v5, %v161_v4  ;;  %v859_v10 = vpack.c.bf16 %v164_v9, %v163_v8  ;;  %v165_v11 = vld [vmem:[%s1340_s5 + $0x20] sm:$0xff]  ;;  %v166_v12 = vld [vmem:[%s1340_s5 + $0x28] sm:$0xff]  ;;  %v167_v14 = vld [vmem:[%s1340_s5 + $0x30] sm:$0xff]  ;;  %s688_s29 = sshll.u32 %s1098_s27, 4  ;;  %s689_s29 = int_to_ptr.vmem [resolvable:$true] %s688_s29 }
  0x61   :  { %v863_v13 = vpack.c.bf16 %v166_v12, %v165_v11  ;;  %v168_v15 = vld [vmem:[%s1340_s5 + $0x38] sm:$0xff]  ;;  %v169_v17 = vld [vmem:[%s1340_s5 + $0x40] sm:$0xff]  ;;  %v170_v18 = vld [vmem:[%s1340_s5 + $0x48] sm:$0xff]  ;;  %s1057_s0 = scalar_lea.vmem %s689_s29, 128  ;;  %p1062_p13 = scmp.lt.s32.totalorder %s689_s29, %s689_s29 }
  0x62   :  { %856 = vmatprep.subr.bf16.mxu0 %v855_v7  ;;  %v867_v16 = vpack.c.bf16 %v168_v15, %v167_v14  ;;  %v871_v19 = vpack.c.bf16 %v170_v18, %v169_v17  ;;  %v171_v20 = vld [vmem:[%s1340_s5 + $0x50] sm:$0xff]  ;;  %v172_v21 = vld [vmem:[%s1340_s5 + $0x58] sm:$0xff]  ;;  %v173_v23 = vld [vmem:[%s1340_s5 + $0x60] sm:$0xff]  ;;  %p1058_p12 = scmp.ne.s32.totalorder %s689_s29, %s1057_s0  ;;  %p1063_p0 = scmp.lt.s32.totalorder %s1057_s0, %s1057_s0 }
  0x63   :  { %137 = vperm.xlu1 %942, %v128_v3   ;;  %132 = vperm.xlu0 %941, %v127_v6   ;;  %v875_v22 = vpack.c.bf16 %v172_v21, %v171_v20  ;;  %v174_v24 = vld [vmem:[%s1340_s5 + $0x68] sm:$0xff]  ;;  %v262_v27 = vld [vmem:[#allocation11 + $0x8] sm:$0xff]  ;;  %v263_v28 = vld [vmem:[#allocation11 + $0x10] sm:$0xff] }
  0x64   :  { %858 = vmatpush3.bf16.msra.mxu0 %v855_v7  ;;  %v879_v25 = vpack.c.bf16 %v174_v24, %v173_v23  ;;  %v261_v26 = vld [vmem:[#allocation11] sm:$0xff]  ;;  %v175_v29 = vld [vmem:[%s1340_s5 + $0x70] sm:$0xff]  ;;  %v176_v30 = vld [vmem:[%s1340_s5 + $0x78] sm:$0xff]  ;;  %p1064_p1 = por %p1063_p0, %p1062_p13 }
  0x65   :  { %860 = vmatprep.subr.bf16.mxu0 %v859_v10  ;;  %v887_v31 = vpack.c.bf16 %v262_v27, %v261_v26  ;;  %v264_v32 = vld [vmem:[#allocation11 + $0x18] sm:$0xff]  ;;  %v265_v34 = vld [vmem:[#allocation11 + $0x20] sm:$0xff]  ;;  %v266_v35 = vld [vmem:[#allocation11 + $0x28] sm:$0xff]  ;;  %v883_v36 = vpack.c.bf16 %v176_v30, %v175_v29  ;;  %v1095_v27 = vmov 0.0|0.0  }
  0x66   :  { %v891_v33 = vpack.c.bf16 %v264_v32, %v263_v28  ;;  %v895_v37 = vpack.c.bf16 %v266_v35, %v265_v34  ;;  %v267_v38 = vld [vmem:[#allocation11 + $0x30] sm:$0xff]  ;;  %v268_v39 = vld [vmem:[#allocation11 + $0x38] sm:$0xff]  ;;  %v269_v41 = vld [vmem:[#allocation11 + $0x40] sm:$0xff]  ;;  %v1097_v28 = vmov 0.0   ;;  %p1065_p2 = pnand %p1064_p1, %p1058_p12 }
  0x67   :  { %888 = vmatprep.subr.bf16.mxu1 %v887_v31  ;;  %v899_v40 = vpack.c.bf16 %v268_v39, %v267_v38  ;;  %v270_v42 = vld [vmem:[#allocation11 + $0x48] sm:$0xff]  ;;  %v271_v44 = vld [vmem:[#allocation11 + $0x50] sm:$0xff]  ;;  %v272_v45 = vld [vmem:[#allocation11 + $0x58] sm:$0xff] }
  0x68   :  { %862 = vmatpush3.bf16.msra.mxu0 %v859_v10  ;;  %890 = vmatpush3.bf16.msra.mxu1 %v887_v31  ;;  %v903_v43 = vpack.c.bf16 %v270_v42, %v269_v41  ;;  %v907_v46 = vpack.c.bf16 %v272_v45, %v271_v44  ;;  %v273_v47 = vld [vmem:[#allocation11 + $0x60] sm:$0xff]  ;;  %v274_v48 = vld [vmem:[#allocation11 + $0x68] sm:$0xff]  ;;  %v699_v52 = vld [vmem:[#allocation3] ss:$0 sm:$0xff]  ;;  %v461_v44 = vlaneseq }
  0x69   :  { %864 = vmatprep.subr.bf16.mxu0 %v863_v13  ;;  %892 = vmatprep.subr.bf16.mxu1 %v891_v33  ;;  %v911_v49 = vpack.c.bf16 %v274_v48, %v273_v47  ;;  %v700_v53 = vld [vmem:[#allocation6] ss:$0 sm:$0xff]  ;;  %v701_v60 = vld [vmem:[#allocation8] ss:$0 sm:$0xff]  ;;  %v275_v3 = vld [vmem:[#allocation11 + $0x70] sm:$0xff] }
  0x6a   :  { %v276_v4 = vld [vmem:[#allocation11 + $0x78] sm:$0xff]  ;;  %v360_v20 = vld [vmem:[%s1344_s9 + $0x8] sm:$0xff]  ;;  %v361_v21 = vld [vmem:[%s1344_s9 + $0x10] sm:$0xff]  ;;  %v462_v45 = vshrl.u32 %v461_v44, 7 }
  0x6b   :  { %v915_v5 = vpack.c.bf16 %v276_v4, %v275_v3  ;;  %v702_v6 = vld [vmem:[#allocation9] ss:$0 sm:$0xff]  ;;  %v703_v14 = vld [vmem:[%s1343_s8] ss:$0 sm:$0xff]  ;;  %v469_v29 = vld [vmem:[%s1346_s11 + $0x8] sm:$0xff] }
  0x6c   :  { %866 = vmatpush3.bf16.msra.mxu0 %v863_v13  ;;  %894 = vmatpush3.bf16.msra.mxu1 %v891_v33  ;;  %v359_v13 = vld [vmem:[%s1344_s9] sm:$0xff]  ;;  %v471_v35 = vld [vmem:[%s1346_s11 + $0x18] sm:$0xff] }
  0x6d   :  { %868 = vmatprep.subr.bf16.mxu0 %v867_v16  ;;  %896 = vmatprep.subr.bf16.mxu1 %v895_v37  ;;  %v468_v30 = vld [vmem:[%s1346_s11] sm:$0xff] }
  0x70   :  { %870 = vmatpush3.bf16.msra.mxu0 %v867_v16  ;;  %898 = vmatpush3.bf16.msra.mxu1 %v895_v37 }
  0x71   :  { %872 = vmatprep.subr.bf16.mxu0 %v871_v19  ;;  %900 = vmatprep.subr.bf16.mxu1 %v899_v40 }
  0x74   :  { %874 = vmatpush3.bf16.msra.mxu0 %v871_v19  ;;  %902 = vmatpush3.bf16.msra.mxu1 %v899_v40 }
  0x75   :  { %876 = vmatprep.subr.bf16.mxu0 %v875_v22  ;;  %904 = vmatprep.subr.bf16.mxu1 %v903_v43 }
  0x78   :  { %878 = vmatpush3.bf16.msra.mxu0 %v875_v22  ;;  %906 = vmatpush3.bf16.msra.mxu1 %v903_v43  ;;  %v362_v22 = vld [vmem:[%s1344_s9 + $0x18] sm:$0xff]  ;;  %v467_v43 = vld [vmem:[%s1345_s10] sm:$0xff]  ;;  %s572_s10 = smul.f32 %s1347_s12, %s1347_s12 }
  0x79   :  { %880 = vmatprep.subr.bf16.mxu0 %v879_v25  ;;  %908 = vmatprep.subr.bf16.mxu1 %v907_v46 }
  0x7c   :  { %882 = vmatpush3.bf16.msra.mxu0 %v879_v25  ;;  %910 = vmatpush3.bf16.msra.mxu1 %v907_v46  ;;  %v464_v46 = vand.u32 127, %v461_v44 }
  0x7d   :  { %884 = vmatprep.subr.bf16.mxu0 %v883_v36  ;;  %912 = vmatprep.subr.bf16.mxu1 %v911_v49 }
  0x7e   :  { %vm465_vm3 = vcmp.eq.s32.totalorder %v462_v45, %v464_v46 }
  0x7f   :  { %v466_v47 = vsel %vm465_vm3, 1.0, %v1097_v28 }
  0x80   :  { %886 = vmatpush3.bf16.msra.mxu0 %v883_v36  ;;  %914 = vmatpush3.bf16.msra.mxu1 %v911_v49  ;;  %v470_v36 = vld [vmem:[%s1346_s11 + $0x10] sm:$0xff] }
  0x81   :  { %916 = vmatprep.subr.bf16.mxu1 %v915_v5 }
  0x84   :  { %918 = vmatpush3.bf16.msra.mxu1 %v915_v5 }
  0x85   :  { %923 = vmatprep.subr.bf16.mxu1 %v1095_v27 }
  0xde   :  { %v117_v50 = vpop.permute.xlu1 %116  ;;  %v112_v51 = vpop.permute.xlu0 %111 }
  0xdf   :  { %v126_v56 = vmul.f32 %v699_v52, %v117_v50  ;;  %v125_v57 = vmul.f32 %v699_v52, %v112_v51  ;;  %v679_v52 = vstv %s572_s10 }
  0xe2   :  { %v138_v54 = vpop.permute.xlu1 %137  ;;  %v133_v55 = vpop.permute.xlu0 %132 }
  0xe3   :  { %v147_v58 = vmul.f32 %v700_v53, %v138_v54  ;;  %v146_v59 = vmul.f32 %v700_v53, %v133_v55 }
  0xe5   :  { %v149_v61 = vadd.f32 %v147_v58, %v126_v56  ;;  %v148_v62 = vadd.f32 %v146_v59, %v125_v57 }
  0xe7   :  { %v157_v63 = vadd.f32 %v701_v60, %v148_v62  ;;  %v158_v0 = vadd.f32 %v701_v60, %v149_v61 }
  0xe9   :  { %943 = vtanh.f32 %v157_v63 }
  0xea   :  { %945 = vtanh.f32 %v158_v0 }
  0xf3   :  { %v944_v1 = vpop.eup %943 }
  0xf4   :  { %v946_v2 = vpop.eup %945  ;;  %791 = vmatprep.mubr.f32.mxu0 %v944_v1 }
  0xf5   :  { %792 = vmatmul.mubr.f32.vlgmr.msra.gmra.mrb[0].mxu0 %v946_v2 }
  0xf6   :  { %833 = vmatprep.mubr.msk.f32.mxu0 %vm363_vm0, %v359_v13 }
 0x1c8   :  { %v793_v7 = vpop.f32.mrb[0].mxu0 }
 0x1c9   :  { %v256_v8 = vadd.f32 %v793_v7, %v702_v6  ;;  %v250_v9 = vpop.f32.mrb[1].mxu0 }
 0x1ca   :  { %v251_v10 = vadd.f32 %v702_v6, %v250_v9 }
 0x1cb   :  { %v260_v12 = vmax.f32 %v256_v8, 0.0 }
 0x1cc   :  { %v259_v11 = vmax.f32 %v251_v10, 0.0 }
 0x1ce   :  { %826 = vmatprep.mubr.f32.mxu1 %v259_v11 }
 0x1cf   :  { %827 = vmatmul.mubr.f32.vlgmr.msra.gmra.mrb[0].mxu1 %v260_v12 }
 0x1d0   :  { %847 = vmatprep.mubr.msk.f32.mxu1 %vm1096_vm1, %v1097_v28 }
 0x2a2   :  { %v828_v15 = vpop.f32.mrb[0].mxu1 }
 0x2a3   :  { %v356_v16 = vadd.f32 %v828_v15, %v703_v14  ;;  %v350_v17 = vpop.f32.mrb[1].mxu1 }
 0x2a4   :  { %v351_v18 = vadd.f32 %v703_v14, %v350_v17 }
 0x2a6   :  { %v919_v19 = vpack.c.bf16 %v356_v16, %v351_v18 }
 0x2a8   :  { %920 = vmatprep.subr.bf16.mxu0 %v919_v19 }
 0x2a9   :  { %922 = vmatpush3.bf16.msra.mxu0 %v919_v19 }
 0x2aa   :  { %850 = vmatprep.subr.mxu0 %v1097_v28 }
 0x2ac   :  { %834 = vmatmul.mubr.msk.f32.vlgmr.msra.gmra.mrb[2].mxu0 %vm363_vm0, %v360_v20 }
 0x2ad   :  { %836 = vmatprep.mubr.msk.f32.mxu0 %vm363_vm0, %v361_v21 }
 0x2b0   :  { %837 = vmatmul.mubr.msk.f32.gmra.mrb[4].mxu0 %vm363_vm0, %v362_v22 }
 0x2b1   :  { %852 = vmatprep.mubr.msk.f32.mxu0 %vm1096_vm1, %v1097_v28 }
 0x37f   :  { %v835_v23 = vpop.f32.mrb[2].mxu0 }
 0x380   :  { %479 = vperm.xlu1 %942, %v835_v23   ;;  %v442_v24 = vpop.f32.mrb[3].mxu0 }
 0x381   :  { %474 = vperm.xlu0 %941, %v442_v24  }
 0x383   :  { %v838_v25 = vpop.f32.mrb[4].mxu0 }
 0x384   :  { %489 = vperm.xlu1 %942, %v838_v25   ;;  %v452_v26 = vpop.f32.mrb[5].mxu0 }
 0x385   :  { %484 = vperm.xlu0 %941, %v452_v26  }
 0x3ff   :  { %v480_v31 = vpop.permute.xlu1 %479 }
 0x400   :  { %v493_v32 = vmul.f32 %v480_v31, %v469_v29  ;;  %v475_v33 = vpop.permute.xlu0 %474 }
 0x401   :  { %v492_v34 = vmul.f32 %v475_v33, %v468_v30 }
 0x403   :  { %v924_v37 = vpack.c.bf16 %v493_v32, %v492_v34  ;;  %v490_v38 = vpop.permute.xlu1 %489 }
 0x404   :  { %v495_v39 = vmul.f32 %v490_v38, %v471_v35  ;;  %v485_v40 = vpop.permute.xlu0 %484 }
 0x405   :  { %v494_v41 = vmul.f32 %v485_v40, %v470_v36  ;;  %925 = vmatpush3.bf16.msra.mxu1 %v924_v37 }
 0x406   :  { %926 = vmatprep.subr.bf16.mxu1 %v1095_v27 }
 0x407   :  { %v927_v42 = vpack.c.bf16 %v495_v39, %v494_v41 }
 0x409   :  { %928 = vmatpush3.bf16.msra.mxu1 %v927_v42 }
 0x40c   :  { %848 = vmatmul.mubr.msk.f32.vlgmr.msra.gmra.mrb[2].mxu1 %vm496_vm2, %v467_v43 }
 0x4df   :  { %v566_v48 = vpop.f32.mrb[2].mxu1 }
 0x4e0   :  { %v570_v49 = vadd.f32 %v566_v48, %v466_v47  ;;  %v849_v50 = vpop.f32.mrb[3].mxu1 }
 0x4e2   :  { %573 = vxpose.xlu0.b32.start.end [1/1] (short) (narrow) %v570_v49, 8  ;;  %851 = vmatpush3.msra.mxu0 %v570_v49 }
 0x562   :  { %v589_v51 = vpop.trf.xlu0 }
 0x563   :  { %853 = vmatmul.mubr.msk.f32.vlgmr.msra.gmra.mrb[6].mxu0 %vm605_vm4, %v589_v51 }
 0x636   :  { %v675_v53 = vpop.f32.mrb[6].mxu0 }
 0x637   :  { %v680_v54 = vmul.f32 %v679_v52, %v675_v53  ;;  %v854_v55 = vpop.f32.mrb[7].mxu0 }
 0x639   :  { %681 = vst.msk [vmem:[#allocation12] sm:$0xff] %vm605_vm4, %v680_v54 }
 0x63a   :  { %1068 = shalt.err (!%p1065_p2)
}
 0x63b   :  { %s1069_s30 = scalar_lea.hbm %s1348_s13, 128 }
 0x63c   :  { %p1070_p3 = scmp.ne.s32.totalorder %s1348_s13, %s1069_s30  ;;  %p1073_p4 = scmp.lt.u32.totalorder %s1069_s30, %s1348_s13 }
 0x63e   :  { %p1075_p5 = pnand %p1073_p4, %p1070_p3 }
 0x640   :  { %1078 = shalt.err (!%p1075_p5)
}
 0x641   :  { %691 = dma.vmem_to_hbm [thread:$0]  %s689_s29, 128, %s1348_s13, [#allocation5]  }
 0x642   :  { %1085 = dma.done.wait [#allocation5], 128  }
 0x643   :  { %1086 = vsyncadd [#allocation5], 4294967168 }
 0x644   :  { %695 = vsyncpa [#allocation4], 1 }
 0x645   :  { %696 = vsyncpa [#allocation7], 1 }
 0x646   :  { %697 = vsyncpa [#allocation10], 1 }
 0x647   :  { %698 = vsyncpa [#allocation5], 1 }

</bundles_post_ra>
